<compile_context>
chip_gen: v6e
topology: v6e:2x2x1
jax: 0.10.0
libtpu: 0.0.40
codegen_flags: <defaults>
</compile_context>

<pallas_src>
import functools
import math

import jax
import jax.numpy as jnp
from jax import lax
from jax.experimental import pallas as pl
from jax.experimental.pallas import tpu as pltpu


def _is_pow2(n):
    return n > 0 and (n & (n - 1)) == 0


def _cyl_grid_kernel(u_ref, out_ref, *, H, W, F, rows):
    """Write one (1, rows, F*2*W) interleaved tile of the (B, H, W, 2) grid."""
    b = pl.program_id(0)
    hb = pl.program_id(1)
    u = u_ref[b]                                  # scalar for this batch element (SMEM)

    two_w = 2 * W
    lanes = F * two_w

    # Lane-pattern quantities (batch/row invariant -> one lane row, broadcast later).
    l = lax.broadcasted_iota(jnp.int32, (1, 1, lanes), dimension=2)
    if F > 1:
        shift = two_w.bit_length() - 1            # log2(2W); 2W is a power of two here
        q = l & (two_w - 1)                       # position inside one interleaved image row
    else:
        q = l
    is_y = (q & 1) == 0                           # even lanes -> channel 0 (y grid)
    w_idx = (q >> 1).astype(jnp.float32)
    x = -1.0 + w_idx * jnp.float32(2.0 / W)

    # atan(tan(pi/2*t)) / (pi/2) == periodic wrap of t into [-1, 1):
    # one floor + mul-add instead of two transcendentals on the single EUP slot.
    t = x + u
    t = t - 2.0 * jnp.floor((t + 1.0) * 0.5)

    # Row-dependent quantity: global h index -> y grid value.
    rr = lax.broadcasted_iota(jnp.int32, (1, rows, 1), dimension=1)
    row0 = hb * rows + rr                         # folded-row index within the batch slab
    if F > 1:
        sub_h = l >> shift                        # which of the F folded H rows this lane is
        h_idx = (row0 * F + sub_h).astype(jnp.float32)    # (1, rows, lanes)
    else:
        h_idx = row0.astype(jnp.float32)                  # (1, rows, 1)
    y = -1.0 + h_idx * jnp.float32(2.0 / H)

    out_ref[...] = jnp.where(is_y, y, t)          # broadcasts to (1, rows, lanes)


def _choose_layout(H, W, max_tile_bytes=4 << 20):
    """Pick (fold factor F, lane width, folded rows, rows per grid block)."""
    two_w = 2 * W
    # Fold H rows into the lane axis when one interleaved image row is narrower
    # than the 128-lane vreg (keeps stores unmasked / lane-dense).
    F = 1
    if two_w < 128 and _is_pow2(two_w):
        while F * two_w < 128 and H % (2 * F) == 0:
            F *= 2
    lanes = F * two_w
    total_rows = H // F                           # folded rows per batch element

    # Rows per grid step: biggest block <= ~4 MiB that divides total_rows and
    # keeps the sublane dim a multiple of 8 (or the full extent).
    if total_rows * lanes * 4 <= max_tile_bytes:
        rows_per_block = total_rows
    else:
        rows_per_block = total_rows               # fallback: whole slab
        limit = max(8, max_tile_bytes // (lanes * 4))
        best = 0
        d = 8
        while d <= min(total_rows, limit):
            if total_rows % d == 0:
                best = d
            d += 8
        if best:
            rows_per_block = best
    return F, lanes, total_rows, rows_per_block


def _reference(u, height, width):
    """Pure-JAX reference mirroring the PyTorch forward (also the tiny-shape path)."""
    u = jnp.asarray(u, dtype=jnp.float32).reshape(-1)
    B = u.shape[0]
    y = -1.0 + 2.0 * jnp.arange(height, dtype=jnp.float32) / height
    x = -1.0 + 2.0 * jnp.arange(width, dtype=jnp.float32) / width
    half_pi = jnp.float32(jnp.pi / 2.0)
    out0 = jnp.broadcast_to(y[None, :, None], (B, height, width))
    out1 = jnp.arctan(jnp.tan(half_pi * (x[None, None, :] + u[:, None, None]))) / half_pi
    out1 = jnp.broadcast_to(out1, (B, height, width))
    return jnp.stack([out0, out1], axis=-1)


def cylinder_grid_gen_v2(u, height, width, *, force_pallas=False):
    """u: (B,) float32 -> (B, height, width, 2) float32."""
    u = jnp.asarray(u, dtype=jnp.float32).reshape(-1)
    B = u.shape[0]

    # Tiny problems: fixed pallas_call launch/per-step overhead dominates; let XLA fuse.
    if not force_pallas and B * height * width * 2 < (1 << 16):
        return _reference(u, height, width)

    F, lanes, total_rows, rows_per_block = _choose_layout(height, width)
    n_row_blocks = total_rows // rows_per_block

    kernel = functools.partial(
        _cyl_grid_kernel, H=height, W=width, F=F, rows=rows_per_block)

    out_bytes = B * height * width * 2 * 4
    cost = pl.CostEstimate(
        flops=10 * B * height * width * 2,
        transcendentals=0,
        bytes_accessed=out_bytes + B * 4)

    tile_bytes = rows_per_block * lanes * 4
    cp_kwargs = dict(dimension_semantics=("parallel", "parallel"))
    if 2 * tile_bytes > (12 << 20):   # keep double-buffered output inside scoped VMEM
        cp_kwargs["vmem_limit_bytes"] = min(int(2.5 * tile_bytes), 128 << 20)

    out = pl.pallas_call(
        kernel,
        out_shape=jax.ShapeDtypeStruct((B, total_rows, lanes), jnp.float32),
        grid_spec=pltpu.PrefetchScalarGridSpec(
            num_scalar_prefetch=1,            # `u` lands in SMEM, read scalar-wise
            grid=(B, n_row_blocks),
            in_specs=[],                      # no tensor inputs beyond the prefetch
            out_specs=pl.BlockSpec((1, rows_per_block, lanes),
                                   lambda b, hb, u_ref: (b, hb, 0)),
            scratch_shapes=[]),
        compiler_params=pltpu.CompilerParams(**cp_kwargs),
        cost_estimate=cost,
    )(u)

    # (B, H//F, F*2W) is row-major contiguous with (B, H, W, 2): metadata-only reshape.
    return out.reshape(B, height, width, 2)


if __name__ == "__main__":
    key = jax.random.PRNGKey(0)
    k1, k2 = jax.random.split(key)

    # Small shape matching the module's typical use; force the Pallas path so the
    # kernel itself is exercised (the auto-dispatcher would route this to XLA).
    B, H, W = 2, 16, 16
    u_small = jax.random.uniform(k1, (B,), jnp.float32, minval=-0.3, maxval=0.3)
    out_small = jax.block_until_ready(
        cylinder_grid_gen_v2(u_small, H, W, force_pallas=True))
    ref_small = _reference(u_small, H, W)
    assert out_small.shape == (B, H, W, 2), out_small.shape
    assert jnp.allclose(out_small, ref_small, atol=1e-5, rtol=1e-5), \
        "mismatch vs reference (small)"

    # A lane-dense shape that takes the natural (non-forced) Pallas path (F == 1).
    B2, H2, W2 = 2, 128, 128
    u_big = jax.random.uniform(k2, (B2,), jnp.float32, minval=-0.7, maxval=0.7)
    out_big = jax.block_until_ready(cylinder_grid_gen_v2(u_big, H2, W2))
    ref_big = _reference(u_big, H2, W2)
    assert out_big.shape == (B2, H2, W2, 2), out_big.shape
    assert jnp.allclose(out_big, ref_big, atol=1e-5, rtol=1e-5), \
        "mismatch vs reference (large)"

    print("KERNEL_OK")
</pallas_src>

<mosaic_0001>
module attributes {stable_mosaic.version = 11 : i64} {
  func.func @_cyl_grid_kernel(%arg0: i32, %arg1: i32, %arg2: memref<2xf32, #tpu.memory_space<smem>>, %arg3: memref<1x4x128xf32, #tpu.memory_space<vmem>>) attributes {dimension_semantics = [#tpu.dimension_semantics<parallel>, #tpu.dimension_semantics<parallel>], iteration_bounds = array<i64: 2, 1>, scalar_prefetch = 1 : i64, scratch_operands = 0 : i64, tpu.core_type = #tpu.core_type<tc>, window_params = [{transform_indices = @transform_0, window_bounds = array<i64: 1, 4, 128>}]} {
    %0 = arith.index_cast %arg0 : i32 to index
    %1 = memref.load %arg2[%0] : memref<2xf32, #tpu.memory_space<smem>>
    %2 = tpu.iota {dimensions = array<i32: 2>} : vector<1x1x128xi32>
    %c31_i32 = arith.constant 31 : i32
    %3 = vector.broadcast %c31_i32 : i32 to vector<1x1x128xi32>
    %4 = arith.andi %2, %3 : vector<1x1x128xi32>
    %c1_i32 = arith.constant 1 : i32
    %5 = vector.broadcast %c1_i32 : i32 to vector<1x1x128xi32>
    %6 = arith.andi %4, %5 : vector<1x1x128xi32>
    %c0_i32 = arith.constant 0 : i32
    %7 = vector.broadcast %c0_i32 : i32 to vector<1x1x128xi32>
    %8 = arith.cmpi eq, %6, %7 : vector<1x1x128xi32>
    %c1_i32_0 = arith.constant 1 : i32
    %9 = vector.broadcast %c1_i32_0 : i32 to vector<1x1x128xi32>
    %10 = arith.shrsi %4, %9 : vector<1x1x128xi32>
    %11 = arith.sitofp %10 : vector<1x1x128xi32> to vector<1x1x128xf32>
    %cst = arith.constant 1.250000e-01 : f32
    %12 = vector.broadcast %cst : f32 to vector<1x1x128xf32>
    %13 = arith.mulf %11, %12 : vector<1x1x128xf32>
    %cst_1 = arith.constant -1.000000e+00 : f32
    %14 = vector.broadcast %cst_1 : f32 to vector<1x1x128xf32>
    %15 = arith.addf %14, %13 : vector<1x1x128xf32>
    %16 = vector.broadcast %1 : f32 to vector<1x1x128xf32>
    %17 = arith.addf %15, %16 : vector<1x1x128xf32>
    %cst_2 = arith.constant 1.000000e+00 : f32
    %18 = vector.broadcast %cst_2 : f32 to vector<1x1x128xf32>
    %19 = arith.addf %17, %18 : vector<1x1x128xf32>
    %cst_3 = arith.constant 5.000000e-01 : f32
    %20 = vector.broadcast %cst_3 : f32 to vector<1x1x128xf32>
    %21 = arith.mulf %19, %20 : vector<1x1x128xf32>
    %22 = math.floor %21 : vector<1x1x128xf32>
    %cst_4 = arith.constant 2.000000e+00 : f32
    %23 = vector.broadcast %cst_4 : f32 to vector<1x1x128xf32>
    %24 = arith.mulf %23, %22 : vector<1x1x128xf32>
    %25 = arith.subf %17, %24 : vector<1x1x128xf32>
    %26 = tpu.iota {dimensions = array<i32: 1>} : vector<1x4x1xi32>
    %c4_i32 = arith.constant 4 : i32
    %27 = arith.muli %arg1, %c4_i32 : i32
    %28 = vector.broadcast %27 : i32 to vector<1x4x1xi32>
    %29 = arith.addi %28, %26 : vector<1x4x1xi32>
    %c5_i32 = arith.constant 5 : i32
    %30 = vector.broadcast %c5_i32 : i32 to vector<1x1x128xi32>
    %31 = arith.shrsi %2, %30 : vector<1x1x128xi32>
    %c4_i32_5 = arith.constant 4 : i32
    %32 = vector.broadcast %c4_i32_5 : i32 to vector<1x4x1xi32>
    %33 = arith.muli %29, %32 : vector<1x4x1xi32>
    %34 = vector.broadcast %33 : vector<1x4x1xi32> to vector<1x4x128xi32>
    %35 = vector.broadcast %31 : vector<1x1x128xi32> to vector<1x4x128xi32>
    %36 = arith.addi %34, %35 : vector<1x4x128xi32>
    %37 = arith.sitofp %36 : vector<1x4x128xi32> to vector<1x4x128xf32>
    %cst_6 = arith.constant 1.250000e-01 : f32
    %38 = vector.broadcast %cst_6 : f32 to vector<1x4x128xf32>
    %39 = arith.mulf %37, %38 : vector<1x4x128xf32>
    %cst_7 = arith.constant -1.000000e+00 : f32
    %40 = vector.broadcast %cst_7 : f32 to vector<1x4x128xf32>
    %41 = arith.addf %40, %39 : vector<1x4x128xf32>
    %42 = vector.shape_cast %8 : vector<1x1x128xi1> to vector<1x1x128xi1>
    %43 = vector.broadcast %42 : vector<1x1x128xi1> to vector<1x4x128xi1>
    %44 = vector.shape_cast %25 : vector<1x1x128xf32> to vector<1x1x128xf32>
    %45 = vector.broadcast %44 : vector<1x1x128xf32> to vector<1x4x128xf32>
    %46 = arith.select %43, %41, %45 : vector<1x4x128xi1>, vector<1x4x128xf32>
    %c0 = arith.constant 0 : index
    %c0_8 = arith.constant 0 : index
    %c0_9 = arith.constant 0 : index
    %47 = vector.load %arg3[%c0, %c0_8, %c0_9] : memref<1x4x128xf32, #tpu.memory_space<vmem>>, vector<1x4x128xf32>
    tpu.vector_store %arg3[%c0, %c0_8, %c0_9], %46 {strides = array<i32>} : memref<1x4x128xf32, #tpu.memory_space<vmem>>, vector<1x4x128xf32>,
    return
  }
  func.func @transform_0(%arg0: i32, %arg1: i32, %arg2: memref<2xf32, #tpu.memory_space<smem>>) -> (i32, i32, i32) {
    %c0_i32 = arith.constant 0 : i32
    %c0_i32_0 = arith.constant 0 : i32
    return %arg0, %arg1, %c0_i32 : i32, i32, i32
  }
}

</mosaic_0001>

<bundles_post_ra>
// kernel: tpu_custom_call.1
= control target key start
LH: loop header
LB: loop body
LE: loop exit
PB: predicated region body
PF: predicated region fallthrough
CT: control target
= control target key end

     0   :  { %s277_s6 = smov [#allocation3]   ;;  %s360_s0 = inlined_call_operand.hbm [shape: f32[2], index: 0, kind: input, shape index: {}]   ;;  %s361_s1 = inlined_call_operand.hbm [shape: f32[2,4,128], index: 1, kind: output, shape index: {}]  }
   0x1   :  { %7 = dma.hbm_to_smem %s360_s0, 16, %s277_s6, [#allocation2] }
   0x2   :  { %255 = dma.done.wait [#allocation2], 16 }
   0x3   :  { %256 = vsyncadd [#allocation2], 4294967280 }
   0x4   :  { %9 = sfence }
   0x5   :  { %10 = vsyncpa [#allocation5], 0 }
   0x6   :  { %12 = vsyncpa [#allocation5 + $0x1], 0  ;;  %s292_s9 = smov 0   ;;  %s294_s10 = smov 0  }
   0x7   :  { %s296_s11 = smov 0   ;;  %s298_s12 = smov 0  }
   0x8 LB: > { %s27_s0 = sadd.s32 1, %s271_s11  ;;  %s157_s13 = sadd.s32 4294967295, %s275_s12   ;;  %s275_s12 = sphi %s298_s12, %s18_s12   ;;  %s271_s11 = sphi %s296_s11, %s366_s11   ;;  %s267_s10 = sphi %s294_s10, %s365_s10   ;;  %s263_s9 = sphi %s292_s9, %s364_s9  }
   0x9   : > { %p29_p0 = scmp.ge.s32.totalorder %s27_s0, 2  ;;  %p45_p1 = scmp.ne.s32.totalorder %s267_s10, %s263_s9 }
   0xa   : > { %s36_s14 = sadd.s32 1, %s267_s10  ;;  %p46_p2 = scmp.eq.s32.totalorder %s157_s13, 1 }
   0xb   : > { %s368_s0 = smov (%p29_p0, %s27_s0), 0  ;;  %p40_p3 = scmp.eq.s32.totalorder %s275_s12, 1 }
   0xc   : > { %s31_s15 = ssub.s32 %s271_s11, %s368_s0  ;;  %p322_p6 = por %p46_p2, %p45_p1 }
   0xd   : > { %p34_p4 = scmp.eq.s32.totalorder %s31_s15, 0  ;;  %p158_p5 = scmp.ne.s32.totalorder %s31_s15, 0 }
   0xe   : > { %p159_p8 = scmp.ge.s32.totalorder %s275_s12, 2 }
   0xf   : > { %s327_s17 = scalar_select %p34_p4, %s267_s10, %s36_s14  }
  0x10   : > { %p329_p7 = por %p158_p5, %p40_p3  ;;  %55 = sbr.rel (%p159_p8) target bundleno = 51 (0x33), region = 12 }
  0x11   : > { %s63_s19 = sld [smem:[#allocation3 + %s271_s11]] (!%p159_p8)  ;;  %s60_s20 = sand.u32 (!%p159_p8), 1, %s267_s10  }
  0x12   : > { %s160_s21 = sshll.u32 (!%p159_p8), %s60_s20, 2  ;;  %s162_s24 = sshll.u32 (!%p159_p8), %s271_s11, 6 }
  0x13   : > { %s62_s22 = scalar_lea.vmem (!%p159_p8), [#allocation4], %s160_s21  ;;  %s108_s27 = scalar_lea.hbm (!%p159_p8), %s361_s1, %s162_s24 }
  0x14   : > { %s110_s23 = sshll.u32 (!%p159_p8), %s62_s22, 4  ;;  %s96_s28 = scalar_lea.sflag (!%p159_p8), [#allocation5], %s60_s20  ;;  %s111_s23 = int_to_ptr.vmem [resolvable:$true] %s110_s23 }
  0x15   : > { %v64_v0 = vlaneseq  ;;  %s213_s29 = scalar_lea.vmem %s111_s23, 64  ;;  %s278_s30 = smov [#allocation4]  }
  0x16   : > { %p214_p9 = scmp.ne.s32.totalorder %s111_s23, %s213_s29  ;;  %s217_s2 = sshll.u32 %s278_s30, 4  ;;  %s218_s2 = int_to_ptr.vmem [resolvable:$false] %s217_s2 }
  0x17   : > { %v65_v1 = vand.u32 127, %v64_v0  ;;  %v81_v2 = vshrl.u32 %v64_v0, 7  ;;  %v73_v10 = vstv %s63_s19  ;;  %s219_s3 = scalar_lea.vmem %s218_s2, 128  ;;  %p220_p12 = scmp.lt.s32.totalorder %s111_s23, %s218_s2 }
  0x18   : > { %p215_p10 = pnand %p214_p9, %p329_p7  ;;  %p221_p13 = scmp.lt.s32.totalorder %s219_s3, %s213_s29 }
  0x19   : > { %v66_v3 = vand.u32 31, %v65_v1  ;;  %v85_v5 = vshra.s32 %v65_v1, 5  ;;  %v86_v6 = vmul.u32 4, %v81_v2 }
  0x1a   : > { %p216_p11 = pneg %p215_p10  ;;  %p222_p0 = por %p221_p13, %p220_p12 }
  0x1b   : > { %v69_v4 = vshra.s32 %v66_v3, 1  ;;  %v87_v9 = vadd.s32 %v86_v6, %v85_v5  ;;  %v67_v17 = vand.u32 1, %v66_v3 }
  0x1c   : > { %p223_p1 = pnand %p222_p0, %p216_p11 }
  0x1d   : > { %v70_v7 = vcvt.s32.f32 %v69_v4  ;;  %v88_v13 = vcvt.s32.f32 %v87_v9  ;;  %vm68_vm0 = vcmp.eq.s32.totalorder %v67_v17, 0 }
  0x1f   : > { %v71_v8 = vmul.f32 0.125, %v70_v7  ;;  %v89_v16 = vmul.f32 0.125, %v88_v13 }
  0x21   : > { %v72_v11 = vadd.f32 -1.0, %v71_v8  ;;  %v90_v20 = vadd.f32 -1.0, %v89_v16 }
  0x23   : > { %v74_v12 = vadd.f32 %v73_v10, %v72_v11 }
  0x25   : > { %v75_v14 = vadd.f32 1.0, %v74_v12 }
  0x27   : > { %v76_v15 = vmul.f32 0.5, %v75_v14 }
  0x29   : > { %v77_v18 = vfloor.f32 %v76_v15 }
  0x2b   : > { %v78_v19 = vmul.f32 2.0, %v77_v18 }
  0x2d   : > { %v79_v21 = vsub.f32 %v74_v12, %v78_v19 }
  0x2f   : > { %v93_v22 = vsel %vm68_vm0, %v90_v20, %v79_v21 }
  0x30   : > { %94 = vst [vmem:[%s62_s22] sm:$0xf] %v93_v22 }
  0x31   : > { %226 = shalt.err (!%p223_p1)
}
  0x32   : > { %165 = dma.vmem_to_hbm [thread:$0]  (%p329_p7), %s111_s23, 64, %s108_s27, %s96_s28  }
  0x33 PF: > { %p171_p2 = scmp.ge.s32.totalorder %s275_s12, 1  ;;  %s122_s4 = sand.u32 1, %s263_s9  }
  0x34   : > { %s123_s5 = scalar_lea.sflag [#allocation5], %s122_s4 }
  0x35   : > { %p168_p3 = pnand %p171_p2, %p322_p6 }
  0x37   : > { %p169_p4 = pneg %p168_p3 }
  0x39   : > { %258 = dma.done.wait (%p169_p4), %s123_s5, 64  }
  0x3a   : > { %260 = vsyncadd (%p169_p4), %s123_s5, 4294967232  ;;  %s18_s12 = sadd.s32 1, %s275_s12   ;;  %s364_s9 = smov %s267_s10 }
  0x3b   : > { %p15_p5 = scmp.ge.s32.totalorder %s18_s12, 3   ;;  %s365_s10 = smov %s327_s17 }
  0x3c   : > { %s366_s11 = smov %s368_s0 }
  0x3d   :  { %17 = sbr.rel (!%p15_p5) target bundleno = 8 (0x8), region = 44 }
  0x42   :  { %128 = vsyncpa [#allocation5], 1 }
  0x43   :  { %130 = vsyncpa [#allocation5 + $0x1], 1 }

</bundles_post_ra>
